<compile_context>
chip_gen: v6e
topology: v6e:2x2x1
jax: 0.10.0
libtpu: 0.0.40
codegen_flags: <defaults>
</compile_context>

<pallas_src>
import functools

import jax
import jax.numpy as jnp
from jax.experimental import pallas as pl
from jax.experimental.pallas import tpu as pltpu

MAX_LIGHT = 5.0
LANE = 128
SUBLANE = 8
# ~4 MiB per block buffer; 4 buffers live (in+out, double buffered) = ~16 MiB.
TARGET_BLOCK_BYTES = 4 * 1024 * 1024
VMEM_LIMIT_BYTES = 32 * 1024 * 1024


def _exp_kernel(x_ref, o_ref, *, max_light):
    # Elementwise upper clamp + exp.  Upcast to f32 (no-op for f32 inputs,
    # required on v5e whose VPU/EUP lack bf16); round once on the store.
    xf = x_ref[...].astype(jnp.float32)
    y = jnp.exp(jnp.minimum(xf, jnp.float32(max_light)))
    o_ref[...] = y.astype(o_ref.dtype)


def _pick_block(count: int, align: int, max_count: int) -> int:
    """Block length along the tiled axis.

    Multiple of `align` (or the full extent), capped at `max_count`, and
    chosen so the grid has at least 2 steps whenever possible so that
    dimension_semantics=("parallel",) can shard work across both v7x
    TensorCores instead of leaving one idle on small/medium inputs.
    """
    if count <= align:
        return count                       # tiny input: one full-extent block
    half = -(-count // 2)                  # cdiv(count, 2)
    half = -(-half // align) * align       # round up to sublane/lane alignment
    return min(max_count, half)


def exp_activation(x: jax.Array, max_light: float = MAX_LIGHT,
                   *, donate_input: bool = False) -> jax.Array:
    """exp(min(x, max_light)) via a tiled, HBM-streaming Pallas TPU kernel."""
    orig_shape = x.shape
    n = x.size
    if n == 0:
        return x

    kernel = functools.partial(_exp_kernel, max_light=float(max_light))
    compiler_params = pltpu.CompilerParams(
        dimension_semantics=("parallel",),
        vmem_limit_bytes=VMEM_LIMIT_BYTES,
    )
    io_alias = {0: 0} if donate_input else {}
    itemsize = x.dtype.itemsize

    if n % LANE == 0:
        # Lane-dense 2-D path: (rows, 128) is a free reshape of a contiguous
        # array, each block DMA is one contiguous HBM transfer (block covers
        # the full 128-wide last dim), and stores are unmasked full-lane vst.
        rows = n // LANE
        max_rows = max(SUBLANE, TARGET_BLOCK_BYTES // (LANE * itemsize))
        blk_rows = _pick_block(rows, SUBLANE, max_rows)
        x2d = x.reshape(rows, LANE)
        out = pl.pallas_call(
            kernel,
            out_shape=jax.ShapeDtypeStruct((rows, LANE), x.dtype),
            grid=(pl.cdiv(rows, blk_rows),),
            in_specs=[pl.BlockSpec((blk_rows, LANE), lambda i: (i, 0))],
            out_specs=pl.BlockSpec((blk_rows, LANE), lambda i: (i, 0)),
            compiler_params=compiler_params,
            input_output_aliases=io_alias,
        )(x2d)
        return out.reshape(orig_shape)

    # Ragged path (n not a multiple of 128): run directly on the flat array
    # with a cdiv grid; Pallas masks the ragged final block's writes, so no
    # wrapper-side pad or slice (no extra HBM passes).
    flat = x.reshape(-1)
    max_elems = max(LANE, TARGET_BLOCK_BYTES // itemsize)
    blk = _pick_block(n, LANE, max_elems)
    out = pl.pallas_call(
        kernel,
        out_shape=jax.ShapeDtypeStruct((n,), x.dtype),
        grid=(pl.cdiv(n, blk),),
        in_specs=[pl.BlockSpec((blk,), lambda i: (i,))],
        out_specs=pl.BlockSpec((blk,), lambda i: (i,)),
        compiler_params=compiler_params,
        input_output_aliases=io_alias,
    )(flat)
    return out.reshape(orig_shape)


if __name__ == "__main__":
    key = jax.random.PRNGKey(0)
    k1, k2 = jax.random.split(key)

    # Small NCHW-like input (batch=2, channels=4, 16x16 spatial); n % 128 == 0.
    x = jax.random.normal(k1, (2, 4, 16, 16), dtype=jnp.float32) * 4.0
    y = jax.block_until_ready(exp_activation(x))
    y_ref = jnp.exp(jnp.minimum(x, MAX_LIGHT))
    assert y.shape == x.shape and y.dtype == x.dtype
    assert jnp.allclose(y, y_ref, rtol=1e-6, atol=1e-6)

    # Ragged size (3*5*7*11 = 1155, not a multiple of 128): masked flat path.
    x2 = jax.random.normal(k2, (3, 5, 7, 11), dtype=jnp.float32) * 4.0
    y2 = jax.block_until_ready(exp_activation(x2))
    y2_ref = jnp.exp(jnp.minimum(x2, MAX_LIGHT))
    assert y2.shape == x2.shape and y2.dtype == x2.dtype
    assert jnp.allclose(y2, y2_ref, rtol=1e-6, atol=1e-6)

    print("KERNEL_OK")
</pallas_src>

<mosaic_0001>
module attributes {stable_mosaic.version = 11 : i64} {
  func.func @_exp_kernel(%arg0: i32, %arg1: memref<8x128xf32, #tpu.memory_space<vmem>>, %arg2: memref<8x128xf32, #tpu.memory_space<vmem>>) attributes {dimension_semantics = [#tpu.dimension_semantics<parallel>], iteration_bounds = array<i64: 2>, scalar_prefetch = 0 : i64, scratch_operands = 0 : i64, tpu.core_type = #tpu.core_type<tc>, window_params = [{transform_indices = @transform_0, window_bounds = array<i64: 8, 128>}, {transform_indices = @transform_1, window_bounds = array<i64: 8, 128>}]} {
    %c0 = arith.constant 0 : index
    %c0_0 = arith.constant 0 : index
    %0 = vector.load %arg1[%c0, %c0_0] : memref<8x128xf32, #tpu.memory_space<vmem>>, vector<8x128xf32>
    %cst = arith.constant 5.000000e+00 : f32
    %1 = vector.broadcast %cst : f32 to vector<8x128xf32>
    %2 = arith.minimumf %0, %1 : vector<8x128xf32>
    %3 = math.exp %2 : vector<8x128xf32>
    %c0_1 = arith.constant 0 : index
    %c0_2 = arith.constant 0 : index
    %4 = vector.load %arg2[%c0_1, %c0_2] : memref<8x128xf32, #tpu.memory_space<vmem>>, vector<8x128xf32>
    tpu.vector_store %arg2[%c0_1, %c0_2], %3 {strides = array<i32>} : memref<8x128xf32, #tpu.memory_space<vmem>>, vector<8x128xf32>,
    return
  }
  func.func @transform_0(%arg0: i32) -> (i32, i32) {
    %c0_i32 = arith.constant 0 : i32
    %c0_i32_0 = arith.constant 0 : i32
    return %arg0, %c0_i32 : i32, i32
  }
  func.func @transform_1(%arg0: i32) -> (i32, i32) {
    %c0_i32 = arith.constant 0 : i32
    %c0_i32_0 = arith.constant 0 : i32
    return %arg0, %c0_i32 : i32, i32
  }
}

</mosaic_0001>

<bundles_post_ra>
// kernel: tpu_custom_call.1
= control target key start
LH: loop header
LB: loop body
LE: loop exit
PB: predicated region body
PF: predicated region fallthrough
CT: control target
= control target key end

     0   :  { %6 = vsyncpa [#allocation3], 0  ;;  %s534_s0 = inlined_call_operand.hbm [shape: f32[16,128], index: 0, kind: input, shape index: {}]   ;;  %s535_s1 = inlined_call_operand.hbm [shape: f32[16,128], index: 1, kind: output, shape index: {}]  }
   0x1   :  { %8 = vsyncpa [#allocation3 + $0x1], 0 }
   0x2   :  { %9 = vsyncpa [#allocation4], 0 }
   0x3   :  { %11 = vsyncpa [#allocation4 + $0x1], 0  ;;  %s387_s6 = smov 0   ;;  %s389_s7 = smov 0  }
   0x4   :  { %s391_s8 = smov 0   ;;  %s393_s9 = smov 0  }
   0x5 LB: > { %s408_s10 = sadd.s32 4294967295, %s373_s9   ;;  %s221_s11 = sadd.s32 4294967294, %s373_s9   ;;  %s373_s9 = sphi %s393_s9, %s552_s9   ;;  %s369_s8 = sphi %s391_s8, %s551_s8   ;;  %s365_s7 = sphi %s389_s7, %s550_s7   ;;  %s361_s6 = sphi %s387_s6, %s549_s6  }
   0x6   : > { %s412_s12 = sadd.s32 1, %s373_s9   ;;  %s24_s13 = sadd.s32 1, %s369_s8 }
   0x7   : > { %s21_s14 = ssub.s32 %s373_s9, %s412_s12  ;;  %p31_p0 = scmp.ne.s32.totalorder %s369_s8, %s365_s7 }
   0x8   : > { %p22_p1 = scmp.eq.s32.totalorder %s21_s14, 0  ;;  %p32_p2 = scmp.eq.s32.totalorder %s373_s9, 0 }
   0x9   : > { %p37_p3 = scmp.ne.s32.totalorder %s365_s7, %s361_s6  ;;  %p38_p4 = scmp.eq.s32.totalorder %s408_s10, 0 }
   0xa   : > { %s424_s15 = scalar_select %p22_p1, %s369_s8, %s24_s13  }
   0xb   : > { %p426_p5 = por %p32_p2, %p31_p0  ;;  %p430_p6 = por %p38_p4, %p37_p3 }
   0xc   : > { %p61_p7 = scmp.eq.s32.totalorder %s408_s10, 1  ;;  %p67_p8 = scmp.eq.s32.totalorder %s221_s11, 1 }
   0xd   : > { %s539_s17 = scalar_select %p430_p6, 1, 0 }
   0xe   : > { %p245_p10 = scmp.lt.s32.totalorder %s373_s9, 2  ;;  %p437_p11 = por %p61_p7, %p31_p0 }
   0xf   : > { %p441_p12 = por %p67_p8, %p37_p3  ;;  %s87_s20 = sand.u32 1, %s369_s8  }
  0x10   : > { %s540_s18 = scalar_select %p437_p11, 1, 0 }
  0x11   : > { %s541_s19 = scalar_select %p441_p12, 1, 0 }
  0x12   : > { %s225_s21 = sshll.u32 %s373_s9, 7  ;;  %s224_s22 = sshll.u32 %s87_s20, 3 }
  0x13   : > { %s450_s25 = scalar_lea.hbm %s534_s0, %s225_s21  ;;  %s91_s26 = scalar_lea.vmem [#allocation2], %s224_s22 }
  0x14   : > { %s98_s27 = sshll.u32 %s91_s26, 4  ;;  %p454_p13 = pnand %p245_p10, %p426_p5  ;;  %s458_s27 = int_to_ptr.vmem [resolvable:$true] %s98_s27 }
  0x15   : > { %s88_s29 = scalar_lea.sflag [#allocation3], %s87_s20  ;;  %s281_s30 = scalar_lea.hbm %s450_s25, 128 }
  0x16   : > { %p282_p2 = scmp.ne.s32.totalorder %s450_s25, %s281_s30  ;;  %p283_p3 = pneg %p454_p13 }
  0x17   : > { %s286_s4 = scalar_lea.hbm %s534_s0, 256  ;;  %p287_p5 = scmp.lt.s32.totalorder %s450_s25, %s534_s0 }
  0x18   : > { %p284_p4 = pnand %p283_p3, %p282_p2  ;;  %p288_p8 = scmp.lt.s32.totalorder %s286_s4, %s281_s30 }
  0x1a   : > { %p285_p7 = pneg %p284_p4  ;;  %p289_p10 = por %p288_p8, %p287_p5 }
  0x1c   : > { %p290_p9 = pnand %p289_p10, %p285_p7 }
  0x1e   : > { %293 = shalt.err (!%p290_p9)
}
  0x1f   : > { %s294_s13 = scalar_lea.vmem %s458_s27, 128  ;;  %s375_s14 = smov [#allocation2]  }
  0x20   : > { %p295_p0 = scmp.ne.s32.totalorder %s458_s27, %s294_s13  ;;  %s299_s16 = sshll.u32 %s375_s14, 4  ;;  %s300_s16 = int_to_ptr.vmem [resolvable:$false] %s299_s16 }
  0x21   : > { %s301_s20 = scalar_lea.vmem %s300_s16, 256  ;;  %p302_p4 = scmp.lt.s32.totalorder %s458_s27, %s300_s16 }
  0x22   : > { %p297_p1 = pnand %p295_p0, %p283_p3  ;;  %p303_p12 = scmp.lt.s32.totalorder %s301_s20, %s294_s13 }
  0x24   : > { %p298_p2 = pneg %p297_p1  ;;  %p304_p11 = por %p303_p12, %p302_p4 }
  0x26   : > { %p305_p6 = pnand %p304_p11, %p298_p2 }
  0x28   : > { %308 = shalt.err (!%p305_p6)
}
  0x29   : > { %240 = dma.hbm_to_vmem [thread:$0]  (!%p454_p13), %s450_s25, 128, %s458_s27, %s88_s29  }
  0x2a   : > { %p543_p9 = scmp.lt.s32.totalorder %s373_s9, 3  ;;  %p544_p7 = scmp.ge.s32.totalorder %s373_s9, 1 }
  0x2c   : > { %p104_p0 = pnand %p544_p7, %p543_p9 }
  0x2d   : > { %s485_s21 = sand.u32 (!%p104_p0), 1, %s365_s7   ;;  %p545_p6 = scmp.ne.s32.totalorder (!%p104_p0), %s539_s17, 0 }
  0x2e   : > { %107 = sbr.rel (%p104_p0) target bundleno = 84 (0x54), region = 24  ;;  %s227_s22 = sshll.u32 (!%p104_p0), %s485_s21, 3 }
  0x2f   : > { %s110_s23 = scalar_lea.sflag (!%p104_p0), [#allocation3], %s485_s21  ;;  %s113_s24 = scalar_lea.vmem (!%p104_p0), [#allocation2], %s227_s22 }
  0x33   : > { %352 = dma.done.wait (%p545_p6), %s110_s23, 128  }
  0x34   : > { %354 = vsyncadd (%p545_p6), %s110_s23, 4294967168  ;;  %v132_v0 = vld [vmem:[%s113_s24] sm:$0xff]  ;;  %s131_s25 = scalar_lea.vmem [#allocation5], %s227_s22  ;;  %s230_s27 = sshll.u32 %s408_s10, 7 }
  0x35   : > { %v133_v1 = vmin.f32 %v132_v0, 5.0  ;;  %s151_s26 = sshll.u32 %s131_s25, 4  ;;  %s149_s17 = scalar_lea.hbm %s535_s1, %s230_s27  ;;  %s494_s26 = int_to_ptr.vmem [resolvable:$true] %s151_s26 }
  0x36   : > { %s138_s30 = scalar_lea.sflag [#allocation4], %s485_s21  ;;  %s309_s2 = scalar_lea.vmem %s494_s26, 128 }
  0x37   : > { %v134_v2 = vmul.f32 1.442695, %v133_v1  ;;  %p310_p11 = scmp.ne.s32.totalorder %s494_s26, %s309_s2  ;;  %p546_p12 = scmp.ne.s32.totalorder %s540_s18, 0 }
  0x38   : > { %s376_s3 = smov [#allocation5]  }
  0x39   : > { %279 = vpow2.f32 %v134_v2  ;;  %p311_p13 = pnand %p310_p11, %p546_p12  ;;  %s313_s4 = sshll.u32 %s376_s3, 4  ;;  %s314_s4 = int_to_ptr.vmem [resolvable:$false] %s313_s4 }
  0x3a   : > { %s315_s10 = scalar_lea.vmem %s314_s4, 256  ;;  %p316_p3 = scmp.lt.s32.totalorder %s494_s26, %s314_s4 }
  0x3b   : > { %p312_p1 = pneg %p311_p13  ;;  %p317_p5 = scmp.lt.s32.totalorder %s315_s10, %s309_s2 }
  0x3d   : > { %p318_p8 = por %p317_p5, %p316_p3 }
  0x3f   : > { %p319_p10 = pnand %p318_p8, %p312_p1 }
  0x46   : > { %v280_v3 = vpop.eup %279 }
  0x47   : > { %136 = vst [vmem:[%s131_s25] sm:$0xff] %v280_v3 }
  0x48   : > { %322 = shalt.err (!%p319_p10)
}
  0x49   : > { %s323_s5 = scalar_lea.hbm %s149_s17, 128  ;;  %s327_s14 = scalar_lea.hbm %s535_s1, 256 }
  0x4a   : > { %p324_p2 = scmp.ne.s32.totalorder %s149_s17, %s323_s5  ;;  %p328_p7 = scmp.lt.s32.totalorder %s149_s17, %s535_s1 }
  0x4b   : > { %p329_p0 = scmp.lt.s32.totalorder %s327_s14, %s323_s5 }
  0x4c   : > { %p325_p4 = pnand %p324_p2, %p546_p12 }
  0x4d   : > { %p330_p6 = por %p329_p0, %p328_p7 }
  0x4e   : > { %p326_p9 = pneg %p325_p4 }
  0x50   : > { %p331_p11 = pnand %p330_p6, %p326_p9 }
  0x52   : > { %334 = shalt.err (!%p331_p11)
}
  0x53   : > { %235 = dma.vmem_to_hbm [thread:$0]  (%p546_p12), %s494_s26, 128, %s149_s17, %s138_s30  }
  0x54 PF: > { %s163_s21 = sand.u32 1, %s361_s6   ;;  %p547_p13 = scmp.ne.s32.totalorder %s541_s19, 0 }
  0x55   : > { %p548_p1 = scmp.ge.s32.totalorder %s373_s9, 2  ;;  %s164_s22 = scalar_lea.sflag [#allocation4], %s163_s21 }
  0x57   : > { %p242_p3 = pnand %p548_p1, %p547_p13 }
  0x59   : > { %p243_p5 = pneg %p242_p3 }
  0x5b   : > { %356 = dma.done.wait (%p243_p5), %s164_s22, 128  }
  0x5c   : > { %358 = vsyncadd (%p243_p5), %s164_s22, 4294967168  ;;  %p14_p8 = scmp.ge.s32.totalorder %s412_s12, 4   ;;  %s549_s6 = smov %s365_s7 }
  0x5d   : > { %s550_s7 = smov %s369_s8  ;;  %s551_s8 = smov %s424_s15 }
  0x5e   : > { %s552_s9 = smov %s412_s12  ;;  %16 = sbr.rel (!%p14_p8) target bundleno = 5 (0x5), region = 69 }
  0x63   :  { %169 = vsyncpa [#allocation3], 1 }
  0x64   :  { %171 = vsyncpa [#allocation3 + $0x1], 1 }
  0x65   :  { %172 = vsyncpa [#allocation4], 1 }
  0x66   :  { %174 = vsyncpa [#allocation4 + $0x1], 1 }

</bundles_post_ra>
